<compile_context>
chip_gen: v6e
topology: v6e:2x2x1
jax: 0.10.0
libtpu: 0.0.40
codegen_flags: <defaults>
</compile_context>

<pallas_src>
import jax
import jax.numpy as jnp
from jax import lax
from jax.experimental import pallas as pl
from jax.experimental.pallas import tpu as pltpu

DROPOUT_P = 0.1  # training-mode dropout, matching the PyTorch module default


def _fmix32(x):
    """murmur3 finalizer: 32-bit avalanche mixer (uint32 in / uint32 out)."""
    x = x ^ (x >> jnp.uint32(16))
    x = x * jnp.uint32(0x85EBCA6B)
    x = x ^ (x >> jnp.uint32(13))
    x = x * jnp.uint32(0xC2B2AE35)
    x = x ^ (x >> jnp.uint32(16))
    return x


def _make_flash_kernel(tq, tk, head_dim, kv_len, dropout_p):
    drop_threshold = int(round(dropout_p * (2.0 ** 32)))  # drop iff bits < threshold
    keep_scale = 1.0 / (1.0 - dropout_p)

    def kernel(seed_ref, q_ref, k_ref, v_ref, o_ref, acc_ref, m_ref, l_ref):
        ki = pl.program_id(2)
        nk = pl.num_programs(2)

        @pl.when(ki == 0)
        def _init():
            m_ref[...] = jnp.full((tq, 1), -jnp.inf, dtype=jnp.float32)
            l_ref[...] = jnp.zeros((tq, 1), dtype=jnp.float32)
            acc_ref[...] = jnp.zeros((tq, head_dim), dtype=jnp.float32)

        q = q_ref[0]  # (tq, D) native dtype (bf16 stays bf16 on the MXU path)
        k = k_ref[0]  # (tk, D)
        v = v_ref[0]  # (tk, D)

        # PyTorch: scaled_qk = qk / (D ** -0.25)  ==  qk * D**0.25.
        # Fold the scalar into q: (tq, D) multiply instead of an (tq, tk) pass.
        scale = float(head_dim) ** 0.25
        qs = q * jnp.asarray(scale, dtype=q.dtype)

        # Scores: contract over D with k left in (tk, D) layout (no k.T).
        s = lax.dot_general(
            qs, k, (((1,), (1,)), ((), ())),
            preferred_element_type=jnp.float32)          # (tq, tk) f32

        # Online softmax update.
        m_prev = m_ref[...]                               # (tq, 1)
        m_new = jnp.maximum(m_prev, jnp.max(s, axis=-1, keepdims=True))
        alpha = jnp.exp(m_prev - m_new)                   # (tq, 1)
        p = jnp.exp(s - m_new)                            # (tq, tk)
        l_ref[...] = alpha * l_ref[...] + jnp.sum(p, axis=-1, keepdims=True)
        m_ref[...] = m_new

        # Dropout mask: integer-threshold compare on hashed global counters.
        # Keyed on (seed, head, global row, global col) so it is independent of
        # the tiling and of grid traversal order.
        bh = pl.program_id(0).astype(jnp.uint32)
        qi = pl.program_id(1)
        seed = seed_ref[0].astype(jnp.uint32)
        row0 = (qi * tq).astype(jnp.uint32)
        col0 = (ki * tk).astype(jnp.uint32)
        rows = lax.broadcasted_iota(jnp.uint32, (tq, tk), 0) + row0
        cols = lax.broadcasted_iota(jnp.uint32, (tq, tk), 1) + col0
        base = _fmix32(seed ^ (bh * jnp.uint32(0x9E3779B1)) ^ jnp.uint32(0x7F4A7C15))
        ctr = rows * jnp.uint32(kv_len) + cols            # unique element id per head
        bits = _fmix32(ctr + base)
        bits = _fmix32(bits ^ (ctr * jnp.uint32(0x01000193)))
        keep = bits >= jnp.uint32(drop_threshold)
        p_kept = jnp.where(keep, p, jnp.float32(0.0))

        # Accumulate; cast probabilities to v's dtype so bf16 inputs keep the
        # fast MXU path, accumulate in f32.
        acc_ref[...] = alpha * acc_ref[...] + jnp.dot(
            p_kept.astype(v.dtype), v, preferred_element_type=jnp.float32)

        @pl.when(ki == nk - 1)
        def _finalize():
            # Fuse softmax 1/l and dropout 1/(1-p) into one (tq, 1) factor.
            inv = jnp.asarray(keep_scale, jnp.float32) / l_ref[...]
            o_ref[0] = (acc_ref[...] * inv).astype(o_ref.dtype)

    return kernel


def _pick_tile(s):
    """Largest preferred tile that evenly divides s, else the full axis."""
    for cand in (256, 128, 512, 64, 32, 16, 8):
        if cand <= s and s % cand == 0:
            return cand
    return s


def attention(q, k, v, seed=0):
    """Forward pass of the PyTorch Attention module. q,k,v: [B, H, S, D].

    Returns (output, None, None) like the reference module.
    """
    B, H, S, D = q.shape
    BH = B * H
    qf = q.reshape(BH, S, D)
    kf = k.reshape(BH, S, D)
    vf = v.reshape(BH, S, D)

    tq = _pick_tile(S)
    tk = _pick_tile(S)
    n_q = S // tq
    n_k = S // tk

    kernel = _make_flash_kernel(tq, tk, head_dim=D, kv_len=S, dropout_p=DROPOUT_P)
    seed_arr = jnp.asarray([seed], dtype=jnp.int32)

    # TODO(synk): when D < 128, pack several heads per grid step so the output
    # slab is lane-dense and the P@V matmul fills the MXU N dimension.
    out = pl.pallas_call(
        kernel,
        out_shape=jax.ShapeDtypeStruct((BH, S, D), q.dtype),
        grid_spec=pltpu.PrefetchScalarGridSpec(
            num_scalar_prefetch=1,
            grid=(BH, n_q, n_k),
            in_specs=[
                pl.BlockSpec((1, tq, D), lambda b, qi, ki, seed: (b, qi, 0)),
                pl.BlockSpec((1, tk, D), lambda b, qi, ki, seed: (b, ki, 0)),
                pl.BlockSpec((1, tk, D), lambda b, qi, ki, seed: (b, ki, 0)),
            ],
            out_specs=pl.BlockSpec((1, tq, D), lambda b, qi, ki, seed: (b, qi, 0)),
            scratch_shapes=[
                pltpu.VMEM((tq, D), jnp.float32),   # acc
                pltpu.VMEM((tq, 1), jnp.float32),   # running max m
                pltpu.VMEM((tq, 1), jnp.float32),   # running denom l
            ],
        ),
        compiler_params=pltpu.CompilerParams(
            # Stateless (counter-hash) dropout -> batch*head and q-tile axes are
            # megacore-parallel; kv axis carries the online-softmax accumulator.
            dimension_semantics=("parallel", "parallel", "arbitrary"),
        ),
    )(seed_arr, qf, kf, vf)

    output = out.reshape(B, H, S, D)
    # PyTorch module returns (output, None, None)
    return output, None, None


if __name__ == "__main__":
    B, H, S, D = 2, 2, 8, 32
    key = jax.random.PRNGKey(0)
    kq, kk, kv = jax.random.split(key, 3)
    q = jax.random.normal(kq, (B, H, S, D), dtype=jnp.float32)
    k = jax.random.normal(kk, (B, H, S, D), dtype=jnp.float32)
    v = jax.random.normal(kv, (B, H, S, D), dtype=jnp.float32)

    out, attn_a, attn_b = attention(q, k, v, seed=0)
    out = jax.block_until_ready(out)
    assert out.shape == (B, H, S, D)
    assert attn_a is None and attn_b is None
    assert bool(jnp.all(jnp.isfinite(out)))
    print("KERNEL_OK")
</pallas_src>

<mosaic_0001>
module attributes {stable_mosaic.version = 11 : i64} {
  func.func @kernel(%arg0: i32, %arg1: i32, %arg2: i32, %arg3: memref<1xi32, #tpu.memory_space<smem>>, %arg4: memref<1x8x32xf32, #tpu.memory_space<vmem>>, %arg5: memref<1x8x32xf32, #tpu.memory_space<vmem>>, %arg6: memref<1x8x32xf32, #tpu.memory_space<vmem>>, %arg7: memref<1x8x32xf32, #tpu.memory_space<vmem>>, %arg8: memref<8x32xf32, #tpu.memory_space<vmem>>, %arg9: memref<8x1xf32, #tpu.memory_space<vmem>>, %arg10: memref<8x1xf32, #tpu.memory_space<vmem>>) attributes {dimension_semantics = [#tpu.dimension_semantics<parallel>, #tpu.dimension_semantics<parallel>, #tpu.dimension_semantics<arbitrary>], iteration_bounds = array<i64: 4, 1, 1>, scalar_prefetch = 1 : i64, scratch_operands = 3 : i64, tpu.core_type = #tpu.core_type<tc>, window_params = [{transform_indices = @transform_0, window_bounds = array<i64: 1, 8, 32>}, {transform_indices = @transform_1, window_bounds = array<i64: 1, 8, 32>}, {transform_indices = @transform_2, window_bounds = array<i64: 1, 8, 32>}, {transform_indices = @transform_3, window_bounds = array<i64: 1, 8, 32>}]} {
    %c0_i32 = arith.constant 0 : i32
    %0 = arith.cmpi eq, %arg2, %c0_i32 : i32
    %1 = arith.extui %0 : i1 to i32
    %c0_i32_0 = arith.constant 0 : i32
    %2 = arith.cmpi ne, %1, %c0_i32_0 : i32
    scf.if %2 {
      %cst_42 = arith.constant 0xFF800000 : f32
      %95 = vector.broadcast %cst_42 : f32 to vector<8x1xf32>
      %c0_43 = arith.constant 0 : index
      %c0_44 = arith.constant 0 : index
      %96 = vector.load %arg9[%c0_43, %c0_44] : memref<8x1xf32, #tpu.memory_space<vmem>>, vector<8x1xf32>
      tpu.vector_store %arg9[%c0_43, %c0_44], %95 {strides = array<i32>} : memref<8x1xf32, #tpu.memory_space<vmem>>, vector<8x1xf32>,
      %cst_45 = arith.constant 0.000000e+00 : f32
      %97 = vector.broadcast %cst_45 : f32 to vector<8x1xf32>
      %c0_46 = arith.constant 0 : index
      %c0_47 = arith.constant 0 : index
      %98 = vector.load %arg10[%c0_46, %c0_47] : memref<8x1xf32, #tpu.memory_space<vmem>>, vector<8x1xf32>
      tpu.vector_store %arg10[%c0_46, %c0_47], %97 {strides = array<i32>} : memref<8x1xf32, #tpu.memory_space<vmem>>, vector<8x1xf32>,
      %cst_48 = arith.constant 0.000000e+00 : f32
      %99 = vector.broadcast %cst_48 : f32 to vector<8x32xf32>
      %c0_49 = arith.constant 0 : index
      %c0_50 = arith.constant 0 : index
      %100 = vector.load %arg8[%c0_49, %c0_50] : memref<8x32xf32, #tpu.memory_space<vmem>>, vector<8x32xf32>
      tpu.vector_store %arg8[%c0_49, %c0_50], %99 {strides = array<i32>} : memref<8x32xf32, #tpu.memory_space<vmem>>, vector<8x32xf32>,
    } else {
    }
    %c0 = arith.constant 0 : index
    %c0_1 = arith.constant 0 : index
    %c0_2 = arith.constant 0 : index
    %3 = vector.load %arg4[%c0, %c0_1, %c0_2] : memref<1x8x32xf32, #tpu.memory_space<vmem>>, vector<1x8x32xf32>
    %4 = vector.shape_cast %3 : vector<1x8x32xf32> to vector<8x32xf32>
    %c0_3 = arith.constant 0 : index
    %c0_4 = arith.constant 0 : index
    %c0_5 = arith.constant 0 : index
    %5 = vector.load %arg5[%c0_3, %c0_4, %c0_5] : memref<1x8x32xf32, #tpu.memory_space<vmem>>, vector<1x8x32xf32>
    %6 = vector.shape_cast %5 : vector<1x8x32xf32> to vector<8x32xf32>
    %c0_6 = arith.constant 0 : index
    %c0_7 = arith.constant 0 : index
    %c0_8 = arith.constant 0 : index
    %7 = vector.load %arg6[%c0_6, %c0_7, %c0_8] : memref<1x8x32xf32, #tpu.memory_space<vmem>>, vector<1x8x32xf32>
    %8 = vector.shape_cast %7 : vector<1x8x32xf32> to vector<8x32xf32>
    %cst = arith.constant 2.37841415 : f32
    %9 = vector.broadcast %cst : f32 to vector<8x32xf32>
    %10 = arith.mulf %4, %9 : vector<8x32xf32>
    %cst_9 = arith.constant dense<0.000000e+00> : vector<8x8xf32>
    %11 = tpu.matmul %10, %6, %cst_9 {dimension_numbers = #tpu.dot_dimension_numbers<[1], [1], [0], [0], [0, 0, 1, 0], [], []>} : vector<8x32xf32>, vector<8x32xf32>, vector<8x8xf32> -> vector<8x8xf32>
    %c0_10 = arith.constant 0 : index
    %c0_11 = arith.constant 0 : index
    %12 = vector.load %arg9[%c0_10, %c0_11] : memref<8x1xf32, #tpu.memory_space<vmem>>, vector<8x1xf32>
    %cst_12 = arith.constant dense<0xFF800000> : vector<8xf32>
    %13 = vector.multi_reduction <maximumf>, %11, %cst_12 [1] : vector<8x8xf32> to vector<8xf32>
    %14 = vector.shape_cast %13 : vector<8xf32> to vector<8x1xf32>
    %15 = arith.maximumf %12, %14 : vector<8x1xf32>
    %16 = arith.subf %12, %15 : vector<8x1xf32>
    %17 = math.exp %16 : vector<8x1xf32>
    %18 = vector.broadcast %15 : vector<8x1xf32> to vector<8x8xf32>
    %19 = arith.subf %11, %18 : vector<8x8xf32>
    %20 = math.exp %19 : vector<8x8xf32>
    %c0_13 = arith.constant 0 : index
    %c0_14 = arith.constant 0 : index
    %21 = vector.load %arg10[%c0_13, %c0_14] : memref<8x1xf32, #tpu.memory_space<vmem>>, vector<8x1xf32>
    %22 = arith.mulf %17, %21 : vector<8x1xf32>
    %cst_15 = arith.constant dense<0.000000e+00> : vector<8xf32>
    %23 = vector.multi_reduction <add>, %20, %cst_15 [1] : vector<8x8xf32> to vector<8xf32>
    %24 = vector.shape_cast %23 : vector<8xf32> to vector<8x1xf32>
    %25 = arith.addf %22, %24 : vector<8x1xf32>
    %c0_16 = arith.constant 0 : index
    %c0_17 = arith.constant 0 : index
    %26 = vector.load %arg10[%c0_16, %c0_17] : memref<8x1xf32, #tpu.memory_space<vmem>>, vector<8x1xf32>
    tpu.vector_store %arg10[%c0_16, %c0_17], %25 {strides = array<i32>} : memref<8x1xf32, #tpu.memory_space<vmem>>, vector<8x1xf32>,
    %c0_18 = arith.constant 0 : index
    %c0_19 = arith.constant 0 : index
    %27 = vector.load %arg9[%c0_18, %c0_19] : memref<8x1xf32, #tpu.memory_space<vmem>>, vector<8x1xf32>
    tpu.vector_store %arg9[%c0_18, %c0_19], %15 {strides = array<i32>} : memref<8x1xf32, #tpu.memory_space<vmem>>, vector<8x1xf32>,
    %c0_20 = arith.constant 0 : index
    %28 = memref.load %arg3[%c0_20] : memref<1xi32, #tpu.memory_space<smem>>
    %c8_i32 = arith.constant 8 : i32
    %29 = arith.muli %arg1, %c8_i32 : i32
    %c8_i32_21 = arith.constant 8 : i32
    %30 = arith.muli %arg2, %c8_i32_21 : i32
    %31 = tpu.iota {dimensions = array<i32: 0>} : vector<8x8xi32>
    %32 = vector.broadcast %29 : i32 to vector<8x8xi32>
    %33 = arith.addi %31, %32 : vector<8x8xi32>
    %34 = tpu.iota {dimensions = array<i32: 1>} : vector<8x8xi32>
    %35 = vector.broadcast %30 : i32 to vector<8x8xi32>
    %36 = arith.addi %34, %35 : vector<8x8xi32>
    %c-1640531535_i32 = arith.constant -1640531535 : i32
    %37 = arith.muli %arg0, %c-1640531535_i32 : i32
    %38 = arith.xori %28, %37 : i32
    %c2135587861_i32 = arith.constant 2135587861 : i32
    %39 = arith.xori %38, %c2135587861_i32 : i32
    %c16_i32 = arith.constant 16 : i32
    %40 = arith.shrui %39, %c16_i32 : i32
    %41 = arith.xori %39, %40 : i32
    %c-2048144789_i32 = arith.constant -2048144789 : i32
    %42 = arith.muli %41, %c-2048144789_i32 : i32
    %c13_i32 = arith.constant 13 : i32
    %43 = arith.shrui %42, %c13_i32 : i32
    %44 = arith.xori %42, %43 : i32
    %c-1028477387_i32 = arith.constant -1028477387 : i32
    %45 = arith.muli %44, %c-1028477387_i32 : i32
    %c16_i32_22 = arith.constant 16 : i32
    %46 = arith.shrui %45, %c16_i32_22 : i32
    %47 = arith.xori %45, %46 : i32
    %c8_i32_23 = arith.constant 8 : i32
    %48 = vector.broadcast %c8_i32_23 : i32 to vector<8x8xi32>
    %49 = arith.muli %33, %48 : vector<8x8xi32>
    %50 = arith.addi %49, %36 : vector<8x8xi32>
    %51 = vector.broadcast %47 : i32 to vector<8x8xi32>
    %52 = arith.addi %50, %51 : vector<8x8xi32>
    %c16_i32_24 = arith.constant 16 : i32
    %53 = vector.broadcast %c16_i32_24 : i32 to vector<8x8xi32>
    %54 = arith.shrui %52, %53 : vector<8x8xi32>
    %55 = arith.xori %52, %54 : vector<8x8xi32>
    %c-2048144789_i32_25 = arith.constant -2048144789 : i32
    %56 = vector.broadcast %c-2048144789_i32_25 : i32 to vector<8x8xi32>
    %57 = arith.muli %55, %56 : vector<8x8xi32>
    %c13_i32_26 = arith.constant 13 : i32
    %58 = vector.broadcast %c13_i32_26 : i32 to vector<8x8xi32>
    %59 = arith.shrui %57, %58 : vector<8x8xi32>
    %60 = arith.xori %57, %59 : vector<8x8xi32>
    %c-1028477387_i32_27 = arith.constant -1028477387 : i32
    %61 = vector.broadcast %c-1028477387_i32_27 : i32 to vector<8x8xi32>
    %62 = arith.muli %60, %61 : vector<8x8xi32>
    %c16_i32_28 = arith.constant 16 : i32
    %63 = vector.broadcast %c16_i32_28 : i32 to vector<8x8xi32>
    %64 = arith.shrui %62, %63 : vector<8x8xi32>
    %65 = arith.xori %62, %64 : vector<8x8xi32>
    %c16777619_i32 = arith.constant 16777619 : i32
    %66 = vector.broadcast %c16777619_i32 : i32 to vector<8x8xi32>
    %67 = arith.muli %50, %66 : vector<8x8xi32>
    %68 = arith.xori %65, %67 : vector<8x8xi32>
    %c16_i32_29 = arith.constant 16 : i32
    %69 = vector.broadcast %c16_i32_29 : i32 to vector<8x8xi32>
    %70 = arith.shrui %68, %69 : vector<8x8xi32>
    %71 = arith.xori %68, %70 : vector<8x8xi32>
    %c-2048144789_i32_30 = arith.constant -2048144789 : i32
    %72 = vector.broadcast %c-2048144789_i32_30 : i32 to vector<8x8xi32>
    %73 = arith.muli %71, %72 : vector<8x8xi32>
    %c13_i32_31 = arith.constant 13 : i32
    %74 = vector.broadcast %c13_i32_31 : i32 to vector<8x8xi32>
    %75 = arith.shrui %73, %74 : vector<8x8xi32>
    %76 = arith.xori %73, %75 : vector<8x8xi32>
    %c-1028477387_i32_32 = arith.constant -1028477387 : i32
    %77 = vector.broadcast %c-1028477387_i32_32 : i32 to vector<8x8xi32>
    %78 = arith.muli %76, %77 : vector<8x8xi32>
    %c16_i32_33 = arith.constant 16 : i32
    %79 = vector.broadcast %c16_i32_33 : i32 to vector<8x8xi32>
    %80 = arith.shrui %78, %79 : vector<8x8xi32>
    %81 = arith.xori %78, %80 : vector<8x8xi32>
    %c429496730_i32 = arith.constant 429496730 : i32
    %82 = vector.broadcast %c429496730_i32 : i32 to vector<8x8xi32>
    %83 = arith.cmpi uge, %81, %82 : vector<8x8xi32>
    %cst_34 = arith.constant 0.000000e+00 : f32
    %84 = vector.broadcast %cst_34 : f32 to vector<8x8xf32>
    %85 = arith.select %83, %20, %84 : vector<8x8xi1>, vector<8x8xf32>
    %c0_35 = arith.constant 0 : index
    %c0_36 = arith.constant 0 : index
    %86 = vector.load %arg8[%c0_35, %c0_36] : memref<8x32xf32, #tpu.memory_space<vmem>>, vector<8x32xf32>
    %87 = vector.broadcast %17 : vector<8x1xf32> to vector<8x32xf32>
    %88 = arith.mulf %87, %86 : vector<8x32xf32>
    %cst_37 = arith.constant dense<0.000000e+00> : vector<8x32xf32>
    %89 = tpu.matmul %85, %8, %cst_37 {dimension_numbers = #tpu.dot_dimension_numbers<[1], [0], [0], [1], [0, 0, 1, 1], [], []>} : vector<8x8xf32>, vector<8x32xf32>, vector<8x32xf32> -> vector<8x32xf32>
    %90 = arith.addf %88, %89 : vector<8x32xf32>
    %c0_38 = arith.constant 0 : index
    %c0_39 = arith.constant 0 : index
    %91 = vector.load %arg8[%c0_38, %c0_39] : memref<8x32xf32, #tpu.memory_space<vmem>>, vector<8x32xf32>
    tpu.vector_store %arg8[%c0_38, %c0_39], %90 {strides = array<i32>} : memref<8x32xf32, #tpu.memory_space<vmem>>, vector<8x32xf32>,
    %c0_i32_40 = arith.constant 0 : i32
    %92 = arith.cmpi eq, %arg2, %c0_i32_40 : i32
    %93 = arith.extui %92 : i1 to i32
    %c0_i32_41 = arith.constant 0 : i32
    %94 = arith.cmpi ne, %93, %c0_i32_41 : i32
    scf.if %94 {
      %c0_42 = arith.constant 0 : index
      %c0_43 = arith.constant 0 : index
      %95 = vector.load %arg10[%c0_42, %c0_43] : memref<8x1xf32, #tpu.memory_space<vmem>>, vector<8x1xf32>
      %cst_44 = arith.constant 1.11111116 : f32
      %96 = vector.broadcast %cst_44 : f32 to vector<8x1xf32>
      %97 = arith.divf %96, %95 : vector<8x1xf32>
      %c0_45 = arith.constant 0 : index
      %c0_46 = arith.constant 0 : index
      %98 = vector.load %arg8[%c0_45, %c0_46] : memref<8x32xf32, #tpu.memory_space<vmem>>, vector<8x32xf32>
      %99 = vector.broadcast %97 : vector<8x1xf32> to vector<8x32xf32>
      %100 = arith.mulf %98, %99 : vector<8x32xf32>
      %c0_47 = arith.constant 0 : index
      %c0_48 = arith.constant 0 : index
      %c0_49 = arith.constant 0 : index
      %101 = vector.load %arg7[%c0_47, %c0_48, %c0_49] : memref<1x8x32xf32, #tpu.memory_space<vmem>>, vector<1x8x32xf32>
      %102 = vector.shape_cast %101 : vector<1x8x32xf32> to vector<8x32xf32>
      %103 = vector.shape_cast %100 : vector<8x32xf32> to vector<1x8x32xf32>
      tpu.vector_store %arg7[%c0_47, %c0_48, %c0_49], %103 {strides = array<i32>} : memref<1x8x32xf32, #tpu.memory_space<vmem>>, vector<1x8x32xf32>,
    } else {
    }
    return
  }
  func.func @transform_0(%arg0: i32, %arg1: i32, %arg2: i32, %arg3: memref<1xi32, #tpu.memory_space<smem>>) -> (i32, i32, i32) {
    %c0_i32 = arith.constant 0 : i32
    %c0_i32_0 = arith.constant 0 : i32
    return %arg0, %arg1, %c0_i32 : i32, i32, i32
  }
  func.func @transform_1(%arg0: i32, %arg1: i32, %arg2: i32, %arg3: memref<1xi32, #tpu.memory_space<smem>>) -> (i32, i32, i32) {
    %c0_i32 = arith.constant 0 : i32
    %c0_i32_0 = arith.constant 0 : i32
    return %arg0, %arg2, %c0_i32 : i32, i32, i32
  }
  func.func @transform_2(%arg0: i32, %arg1: i32, %arg2: i32, %arg3: memref<1xi32, #tpu.memory_space<smem>>) -> (i32, i32, i32) {
    %c0_i32 = arith.constant 0 : i32
    %c0_i32_0 = arith.constant 0 : i32
    return %arg0, %arg2, %c0_i32 : i32, i32, i32
  }
  func.func @transform_3(%arg0: i32, %arg1: i32, %arg2: i32, %arg3: memref<1xi32, #tpu.memory_space<smem>>) -> (i32, i32, i32) {
    %c0_i32 = arith.constant 0 : i32
    %c0_i32_0 = arith.constant 0 : i32
    return %arg0, %arg1, %c0_i32 : i32, i32, i32
  }
}

</mosaic_0001>

<bundles_post_ra>
// kernel: tpu_custom_call.1
= control target key start
LH: loop header
LB: loop body
LE: loop exit
PB: predicated region body
PF: predicated region fallthrough
CT: control target
= control target key end

     0   :  { %s1225_s0 = inlined_call_operand.<no memory space> [shape: s32[1], index: 0, kind: input, shape index: {}]   ;;  %s1226_s1 = inlined_call_operand.hbm [shape: f32[4,8,32], index: 1, kind: input, shape index: {}]   ;;  %s1227_s2 = inlined_call_operand.hbm [shape: f32[4,8,32], index: 2, kind: input, shape index: {}]   ;;  %s1228_s3 = inlined_call_operand.hbm [shape: f32[4,8,32], index: 3, kind: input, shape index: {}]   ;;  %s1229_s4 = inlined_call_operand.hbm [shape: f32[4,8,32], index: 4, kind: output, shape index: {}]  }
   0x1   :  { %1233 = sst [smem:[#allocation19_spill]] %s1227_s2 }
   0x2   :  { %9 = sst [smem:[#allocation6]] %s1225_s0 }
   0x3   :  { %10 = vsyncpa [#allocation8], 0 }
   0x4   :  { %12 = vsyncpa [#allocation8 + $0x1], 0 }
   0x5   :  { %13 = vsyncpa [#allocation11], 0 }
   0x6   :  { %15 = vsyncpa [#allocation11 + $0x1], 0 }
   0x7   :  { %16 = vsyncpa [#allocation9], 0 }
   0x8   :  { %18 = vsyncpa [#allocation9 + $0x1], 0  ;;  %s1016_s17 = smov 0   ;;  %s1018_s18 = smov 0  }
   0x9   :  { %s1020_s19 = smov 0   ;;  %s1022_s20 = smov 0  }
   0xa   :  { %s1024_s21 = smov 0   ;;  %s1026_s22 = smov 0  }
   0xb LB: > { %1234 = sst [smem:[#allocation17_spill]] %s974_s21  ;;  %s1047_s0 = sadd.s32 4294967295, %s978_s22   ;;  %s978_s22 = sphi %s1026_s22, %s24_s22   ;;  %s974_s21 = sphi %s1024_s21, %s1245_s21   ;;  %s970_s20 = sphi %s1022_s20, %s1244_s20   ;;  %s966_s19 = sphi %s1020_s19, %s1248_s19   ;;  %s962_s18 = sphi %s1018_s18, %s1247_s18   ;;  %s958_s17 = sphi %s1016_s17, %s1246_s17  }
   0xc   : > { %s691_s23 = sadd.s32 4294967294, %s978_s22   ;;  %s43_s24 = sadd.s32 1, %s974_s21 }
   0xd   : > { %s52_s25 = sadd.s32 1, %s966_s19  ;;  %p45_p0 = scmp.ge.s32.totalorder %s43_s24, 4 }
   0xe   : > { %p59_p1 = scmp.ne.s32.totalorder %s966_s19, %s962_s18  ;;  %p60_p2 = scmp.eq.s32.totalorder %s978_s22, 0 }
   0xf   : > { %p65_p3 = scmp.ne.s32.totalorder %s962_s18, %s958_s17  ;;  %s1250_s24 = smov (%p45_p0, %s43_s24), 0 }
  0x10   : > { %1235 = sst [smem:[#allocation18_spill]] %s1250_s24  ;;  %p1059_p4 = por %p60_p2, %p59_p1 }
  0x11   : > { %p66_p5 = scmp.eq.s32.totalorder %s1047_s0, 0  ;;  %s47_s27 = ssub.s32 %s974_s21, %s1250_s24 }
  0x12   : > { %p147_p6 = scmp.eq.s32.totalorder %s1047_s0, 3  ;;  %p50_p7 = scmp.eq.s32.totalorder %s47_s27, 0 }
  0x13   : > { %p1067_p8 = por %p66_p5, %p65_p3  ;;  %p153_p10 = scmp.eq.s32.totalorder %s691_s23, 3 }
  0x14   : > { %p1071_p9 = por %p147_p6, %p59_p1  ;;  %p748_p12 = scmp.lt.s32.totalorder %s978_s22, 4 }
  0x15   : > { %s1076_s30 = scalar_select %p50_p7, %s966_s19, %s52_s25  }
  0x16   : > { %p1078_p11 = por %p153_p10, %p65_p3  ;;  %s1230_s6 = sand.u32 1, %s966_s19  }
  0x17   : > { %s1086_s7 = sshll.u32 %s1230_s6, 3  ;;  %s1089_s8 = sshll.u32 %s974_s21, 7 }
  0x18   : > { %p1093_p13 = pnand %p748_p12, %p1059_p4  ;;  %s192_s10 = sand.u32 1, %s978_s22  }
  0x19   : > { %s1241_s2 = sld [smem:[#allocation19_spill]]  ;;  %s196_s14 = scalar_lea.vmem [#allocation10], %s1086_s7 }
  0x1a   : > { %s204_s15 = sshll.u32 %s196_s14, 4  ;;  %p700_p0 = scmp.ge.s32.totalorder %s978_s22, 1  ;;  %s205_s15 = int_to_ptr.vmem [resolvable:$true] %s204_s15 }
  0x1b   : > { %p228_p1 = scmp.lt.s32.totalorder %s978_s22, 5  ;;  %s1105_s16 = scalar_lea.sflag [#allocation11], %s192_s10 }
  0x1c   : > { %p812_p2 = pneg %p1093_p13  ;;  %s823_s23 = scalar_lea.vmem %s205_s15, 128 }
  0x1d   : > { %p824_p3 = scmp.ne.s32.totalorder %s205_s15, %s823_s23  ;;  %s980_s25 = smov [#allocation10]  }
  0x1e   : > { %s828_s26 = sshll.u32 %s980_s25, 4  ;;  %s829_s26 = int_to_ptr.vmem [resolvable:$false] %s828_s26 }
  0x1f   : > { %s202_s13 = scalar_lea.hbm %s1241_s2, %s1089_s8  ;;  %p826_p4 = pnand %p824_p3, %p812_p2 }
  0x20   : > { %s830_s27 = scalar_lea.vmem %s829_s26, 256  ;;  %p831_p6 = scmp.lt.s32.totalorder %s205_s15, %s829_s26 }
  0x21   : > { %p827_p5 = pneg %p826_p4  ;;  %p832_p7 = scmp.lt.s32.totalorder %s830_s27, %s823_s23 }
  0x23   : > { %p833_p10 = por %p832_p7, %p831_p6 }
  0x25   : > { %p834_p12 = pnand %p833_p10, %p827_p5 }
  0x27   : > { %837 = shalt.err (!%p834_p12)
}
  0x28   : > { %740 = dma.hbm_to_vmem [thread:$0]  (!%p1093_p13), %s202_s13, 128, %s205_s15, %s1105_s16  }
  0x29   : > { %p1119_p3 = pnand %p700_p0, %p228_p1  ;;  %s183_s14 = scalar_lea.hbm %s1226_s1, %s1089_s8 }
  0x2a   : > { %s177_s23 = scalar_lea.vmem [#allocation7], %s1086_s7  ;;  %s221_s6 = scalar_lea.hbm %s1228_s3, %s1089_s8 }
  0x2b   : > { %s185_s25 = sshll.u32 %s177_s23, 4  ;;  %s1243_s2 = sand.u32 1, %s966_s19   ;;  %s186_s25 = int_to_ptr.vmem [resolvable:$true] %s185_s25 }
  0x2c   : > { %s174_s24 = scalar_lea.sflag [#allocation8], %s1243_s2  ;;  %s851_s13 = scalar_lea.vmem %s186_s25, 128 }
  0x2d   : > { %p852_p4 = scmp.ne.s32.totalorder %s186_s25, %s851_s13  ;;  %s981_s15 = smov [#allocation7]  }
  0x2e   : > { %s856_s21 = sshll.u32 %s981_s15, 4  ;;  %s857_s21 = int_to_ptr.vmem [resolvable:$false] %s856_s21 }
  0x2f   : > { %p854_p0 = pnand %p852_p4, %p812_p2  ;;  %s858_s11 = scalar_lea.vmem %s857_s21, 256 }
  0x30   : > { %p859_p5 = scmp.lt.s32.totalorder %s186_s25, %s857_s21  ;;  %p860_p6 = scmp.lt.s32.totalorder %s858_s11, %s851_s13 }
  0x31   : > { %p855_p1 = pneg %p854_p0 }
  0x32   : > { %p861_p7 = por %p860_p6, %p859_p5 }
  0x34   : > { %p862_p10 = pnand %p861_p7, %p855_p1 }
  0x36   : > { %865 = shalt.err (!%p862_p10)
}
  0x37   : > { %737 = dma.hbm_to_vmem [thread:$0]  (!%p1093_p13), %s183_s14, 128, %s186_s25, %s174_s24  }
  0x38   : > { %s215_s2 = scalar_lea.vmem [#allocation12], %s1086_s7  ;;  %s982_s26 = smov [#allocation12]  }
  0x39   : > { %s223_s12 = sshll.u32 %s215_s2, 4  ;;  %s884_s21 = sshll.u32 %s982_s26, 4  ;;  %s224_s12 = int_to_ptr.vmem [resolvable:$true] %s223_s12  ;;  %s885_s21 = int_to_ptr.vmem [resolvable:$false] %s884_s21 }
  0x3a   : > { %s879_s23 = scalar_lea.vmem %s224_s12, 128  ;;  %s886_s27 = scalar_lea.vmem %s885_s21, 256 }
  0x3b   : > { %p880_p12 = scmp.ne.s32.totalorder %s224_s12, %s879_s23  ;;  %p887_p1 = scmp.lt.s32.totalorder %s224_s12, %s885_s21 }
  0x3c   : > { %p888_p5 = scmp.lt.s32.totalorder %s886_s27, %s879_s23 }
  0x3d   : > { %p882_p4 = pnand %p880_p12, %p812_p2 }
  0x3e   : > { %p889_p6 = por %p888_p5, %p887_p1 }
  0x3f   : > { %p883_p0 = pneg %p882_p4 }
  0x41   : > { %p890_p7 = pnand %p889_p6, %p883_p0 }
  0x43   : > { %893 = shalt.err (!%p890_p7)
}
  0x44   : > { %743 = dma.hbm_to_vmem [thread:$0]  (!%p1093_p13), %s221_s6, 128, %s224_s12, %s1105_s16  }
  0x45   : > { %232 = sbr.rel (%p1119_p3) target bundleno = 864 (0x360), region = 32  ;;  %s1154_s14 = sand.u32 (!%p1119_p3), 1, %s962_s18  }
  0x46   : > { %s1157_s25 = sshll.u32 (!%p1119_p3), %s1154_s14, 3  ;;  %s235_s9 = scalar_lea.sflag (!%p1119_p3), [#allocation8], %s1154_s14 }
  0x47   : > { %s238_s13 = scalar_lea.vmem (!%p1119_p3), [#allocation7], %s1157_s25 }
  0x4a   : > { %945 = dma.done.wait (%p1067_p8), %s235_s9, 128  }
  0x4b   : > { %947 = vsyncadd (%p1067_p8), %s235_s9, 4294967168  ;;  %s243_s6 = sand.u32 1, %s1047_s0   ;;  %s247_s16 = scalar_lea.vmem [#allocation10], %s1157_s25 }
  0x4c   : > { %s244_s8 = scalar_lea.sflag [#allocation11], %s243_s6 }
  0x4d   : > { %949 = dma.done.wait (%p1067_p8), %s244_s8, 256  }
  0x4e   : > { %951 = vsyncadd (%p1067_p8), %s244_s8, 4294967040  ;;  %vm296_vm0 = vcmask 261120   ;;  %v983_v0 = vmov 0.0   ;;  %vm984_vm1 = vmmov 0   ;;  %v299_v1 = vld [vmem:[%s247_s16] sm:$0xff]  ;;  %v298_v2 = vld [vmem:[%s238_s13] sm:$0xff]  ;;  %v408_v14 = vlaneseq }
  0x4f   : > { %716 = vmatprep.subr.mxu0 %v983_v0  ;;  %297 = vst.msk [vmem:[#allocation2] sm:$0xff] %vm296_vm0, %v983_v0  ;;  %718 = vmatprep.mubr.msk.f32.mxu0 %vm984_vm1, %v983_v0  ;;  %v301_v3 = vmul.f32 2.3784142, %v298_v2  ;;  %vm293_vm2 = vcmask 7168   ;;  %v985_v4 = vmov -inf   ;;  %vm380_vm3 = vcmask 64512  }
  0x50   : > { %721 = vmatprep.subr.mxu1 %v983_v0  ;;  %723 = vmatprep.mubr.msk.f32.mxu1 %vm984_vm1, %v983_v0  ;;  %294 = vst.msk [vmem:[#allocation3] sm:$0xff] %vm293_vm2, %v985_v4  ;;  %295 = vst.msk [vmem:[#allocation4] sm:$0xff] %vm293_vm2, %v983_v0  ;;  %v986_v8 = vmov 0   ;;  %s256_s0 = scalar_lea.vmem [#allocation12], %s1157_s25  ;;  %s405_s28 = sld [smem:[#allocation6]]  ;;  %v409_v15 = vshrl.u32 %v408_v14, 7 }
  0x51   : > { %717 = vmatpush3.xpose.msk.msra.mxu0 %vm296_vm0, %v299_v1  ;;  %802 = vset.pattern.permute.xlu0 %v986_v8  ;;  %v300_v13 = vld [vmem:[%s256_s0] sm:$0xff]  ;;  %s416_s10 = smul.u32 2654435761, %s970_s20  ;;  %v413_v16 = vand.u32 127, %v408_v14  ;;  %s709_s9 = sshll.u32 %s970_s20, 7 }
  0x52   : > { %803 = vset.pattern.permute.xlu1 %v986_v8  ;;  %722 = vmatpush3.msra.mxu1 %v300_v13  ;;  %v427_v17 = vmul.u32 8, %v409_v15  ;;  %s288_s13 = scalar_lea.vmem [#allocation13], %s1157_s25  ;;  %s560_s0 = scalar_lea.hbm %s1229_s4, %s709_s9 }
  0x53   : > { %s562_s6 = sshll.u32 %s288_s13, 4  ;;  %s563_s6 = int_to_ptr.vmem [resolvable:$true] %s562_s6 }
  0x54   : > { %719 = vmatmul.mubr.msk.f32.vlgmr.msra.gmra.mxu0 %vm296_vm0, %v301_v3  ;;  %v428_v18 = vadd.s32 %v427_v17, %v413_v16 }
  0x56   : > { %s417_s15 = sxor.u32 %s416_s10, %s405_s28  ;;  %v439_v29 = vmul.u32 16777619, %v428_v18  ;;  %v451_v54 = vld [vmem:[#allocation2] sm:$0xff]  ;;  %s548_s28 = scalar_lea.sflag [#allocation9], %s1154_s14 }
  0x57   : > { %v379_v9 = vld [vmem:[#allocation3] sm:$0xff]  ;;  %s418_s11 = sxor.u32 2135587861, %s417_s15  ;;  %v396_v47 = vld [vmem:[#allocation4] sm:$0xff]  ;;  %s894_s10 = scalar_lea.vmem %s563_s6, 128 }
  0x58   : > { %s419_s2 = sshrl.u32 %s418_s11, 16  ;;  %p895_p8 = scmp.ne.s32.totalorder %s563_s6, %s894_s10 }
  0x59   : > { %s420_s12 = sxor.u32 %s419_s2, %s418_s11  ;;  %s987_s15 = smov [#allocation13]  }
  0x5a   : > { %s421_s23 = smul.u32 2246822507, %s420_s12  ;;  %p896_p13 = pnand %p895_p8, %p1071_p9 }
  0x5b   : > { %s898_s20 = sshll.u32 %s987_s15, 4  ;;  %s899_s20 = int_to_ptr.vmem [resolvable:$false] %s898_s20 }
  0x5c   : > { %s422_s26 = sshrl.u32 %s421_s23, 13  ;;  %p897_p2 = pneg %p896_p13 }
  0x5d   : > { %s423_s21 = sxor.u32 %s422_s26, %s421_s23  ;;  %s900_s25 = scalar_lea.vmem %s899_s20, 256 }
  0x5e   : > { %s424_s27 = smul.u32 3266489909, %s423_s21  ;;  %p901_p3 = scmp.lt.s32.totalorder %s563_s6, %s899_s20 }
  0x5f   : > { %p902_p10 = scmp.lt.s32.totalorder %s900_s25, %s894_s10 }
  0x60   : > { %s425_s24 = sshrl.u32 %s424_s27, 16 }
  0x61   : > { %s426_s7 = sxor.u32 %s425_s24, %s424_s27  ;;  %p903_p12 = por %p902_p10, %p901_p3 }
  0x62   : > { %v429_v19 = vstv %s426_s7 }
  0x63   : > { %v430_v20 = vadd.s32 %v429_v19, %v428_v18  ;;  %p904_p4 = pnand %p903_p12, %p897_p2 }
  0x65   : > { %v431_v21 = vshrl.u32 %v430_v20, 16 }
  0x67   : > { %v432_v22 = vxor.u32 %v431_v21, %v430_v20 }
  0x69   : > { %v433_v23 = vmul.u32 2246822507, %v432_v22 }
  0x6b   : > { %v434_v24 = vshrl.u32 %v433_v23, 13 }
  0x6d   : > { %v435_v25 = vxor.u32 %v434_v24, %v433_v23 }
  0x6f   : > { %v436_v26 = vmul.u32 3266489909, %v435_v25 }
  0x71   : > { %v437_v27 = vshrl.u32 %v436_v26, 16 }
  0x73   : > { %v438_v28 = vxor.u32 %v437_v27, %v436_v26 }
  0x75   : > { %v440_v30 = vxor.u32 %v439_v29, %v438_v28 }
  0x77   : > { %v441_v31 = vshrl.u32 %v440_v30, 16 }
  0x79   : > { %v442_v32 = vxor.u32 %v441_v31, %v440_v30 }
  0x7b   : > { %v443_v33 = vmul.u32 2246822507, %v442_v32 }
  0x7d   : > { %v444_v34 = vshrl.u32 %v443_v33, 13 }
  0x7f   : > { %v445_v36 = vxor.u32 %v444_v34, %v443_v33 }
  0x81   : > { %v446_v39 = vmul.u32 3266489909, %v445_v36 }
  0x83   : > { %v447_v40 = vshrl.u32 %v446_v39, 16 }
  0x85   : > { %v448_v41 = vxor.u32 %v447_v40, %v446_v39 }
  0x87   : > { %vm449_vm4 = vcmp.ge.u32.totalorder %v448_v41, 429496730 }
 0x114   : > { %v375_v5 = vpop.f32.mrf.mxu0 }
 0x115   : > { %v381_v6 = vsel %vm380_vm3, %v375_v5, -inf }
 0x116   : > { %382 = vmax.xlane.f32.xlu0 %v381_v6  ;;  %v720_v7 = vpop.f32.mrf.mxu0 }
 0x19f   : > { %v383_v10 = vpop.xlane.xlu0 %382 }
 0x1a0   : > { %v384_v11 = vmax.f32 %v379_v9, %v383_v10 }
 0x1a2   : > { %v385_v12 = vsub.f32 %v379_v9, %v384_v11  ;;  %404 = vst.msk [vmem:[#allocation3] sm:$0xff] %vm293_vm2, %v384_v11  ;;  %390 = vperm.xlu0 %802, %v384_v11  }
 0x1a4   : > { %v386_v43 = vmul.f32 1.442695, %v385_v12 }
 0x21d   : > { %v391_v35 = vpop.permute.xlu0 %390 }
 0x21e   : > { %v393_v37 = vsub.f32 %v375_v5, %v391_v35 }
 0x220   : > { %v394_v38 = vmul.f32 1.442695, %v393_v37 }
 0x222   : > { %804 = vpow2.f32 %v394_v38 }
 0x223   : > { %806 = vpow2.f32 %v386_v43 }
 0x22f   : > { %v805_v42 = vpop.eup %804 }
 0x230   : > { %v450_v44 = vsel %vm449_vm4, %v805_v42, 0.0  ;;  %v398_v45 = vsel %vm380_vm3, %v805_v42, 0.0  ;;  %v807_v46 = vpop.eup %806 }
 0x231   : > { %724 = vmatmul.mubr.msk.f32.vlgmr.msra.gmra.mxu1 %vm380_vm3, %v450_v44  ;;  %399 = vadd.xlane.f32.xlu1 %v398_v45  ;;  %v397_v48 = vmul.f32 %v807_v46, %v396_v47 }
 0x242   : > { %454 = vperm.xlu1 %803, %v807_v46  }
 0x2ba   : > { %v400_v49 = vpop.xlane.xlu1 %399 }
 0x2bb   : > { %v401_v50 = vadd.f32 %v400_v49, %v397_v48 }
 0x2bd   : > { %403 = vst.msk [vmem:[#allocation4] sm:$0xff] %vm293_vm2, %v401_v50 }
 0x2be   : > { %v455_v55 = vpop.permute.xlu1 %454 }
 0x2bf   : > { %v457_v56 = vmul.f32 %v455_v55, %v451_v54 }
 0x2c4   : > { %v536_v51 = vld [vmem:[#allocation4] sm:$0xff] }
 0x2c5   : > { %808 = vrcp.f32 %v536_v51 }
 0x2d2   : > { %v809_v52 = vpop.eup %808 }
 0x2d3   : > { %v538_v53 = vmul.f32 1.1111112, %v809_v52 }
 0x2d5   : > { %542 = vperm.xlu1 %803, %v538_v53  }
 0x2f1   : > { %v527_v57 = vpop.f32.mrf.mxu1 }
 0x2f2   : > { %v531_v58 = vadd.f32 %v527_v57, %v457_v56 }
 0x2f3   : > { %v725_v59 = vpop.f32.mrf.mxu1 }
 0x2f4   : > { %532 = vst.msk [vmem:[#allocation2] sm:$0xff] %vm296_vm0, %v531_v58 }
 0x2fb   : > { %v539_v60 = vld [vmem:[#allocation2] sm:$0xff] }
 0x350   : > { %v543_v61 = vpop.permute.xlu1 %542 }
 0x351   : > { %v545_v62 = vmul.f32 %v543_v61, %v539_v60 }
 0x353   : > { %546 = vst.msk [vmem:[%s288_s13] sm:$0xff] %vm296_vm0, %v545_v62 }
 0x354   : > { %907 = shalt.err (!%p904_p4)
}
 0x355   : > { %s908_s11 = scalar_lea.hbm %s560_s0, 128  ;;  %s912_s12 = scalar_lea.hbm %s1229_s4, 512 }
 0x356   : > { %p909_p0 = scmp.ne.s32.totalorder %s560_s0, %s908_s11  ;;  %p913_p6 = scmp.lt.s32.totalorder %s560_s0, %s1229_s4 }
 0x357   : > { %p914_p7 = scmp.lt.s32.totalorder %s912_s12, %s908_s11 }
 0x358   : > { %p910_p1 = pnand %p909_p0, %p1071_p9 }
 0x359   : > { %p915_p8 = por %p914_p7, %p913_p6 }
 0x35a   : > { %p911_p5 = pneg %p910_p1 }
 0x35c   : > { %p916_p13 = pnand %p915_p8, %p911_p5 }
 0x35e   : > { %919 = shalt.err (!%p916_p13)
}
 0x35f   : > { %732 = dma.vmem_to_hbm [thread:$0]  (%p1071_p9), %s563_s6, 128, %s560_s0, %s548_s28  }
 0x360 PF: > { %p749_p2 = scmp.ge.s32.totalorder %s978_s22, 2  ;;  %s574_s21 = sand.u32 1, %s958_s17  }
 0x361   : > { %s575_s27 = scalar_lea.sflag [#allocation9], %s574_s21 }
 0x362   : > { %p745_p3 = pnand %p749_p2, %p1078_p11 }
 0x364   : > { %p746_p10 = pneg %p745_p3 }
 0x366   : > { %953 = dma.done.wait (%p746_p10), %s575_s27, 128  }
 0x367   : > { %955 = vsyncadd (%p746_p10), %s575_s27, 4294967168  ;;  %s24_s22 = sadd.s32 1, %s978_s22   ;;  %s1244_s20 = sld [smem:[#allocation17_spill]] }
 0x368   : > { %p21_p12 = scmp.ge.s32.totalorder %s24_s22, 6   ;;  %s1245_s21 = sld [smem:[#allocation18_spill]] }
 0x369   : > { %s1246_s17 = smov %s962_s18  ;;  %s1247_s18 = smov %s966_s19 }
 0x36a   : > { %s1248_s19 = smov %s1076_s30  ;;  %23 = sbr.rel (!%p21_p12) target bundleno = 11 (0xb), region = 109 }
 0x36f   :  { %580 = vsyncpa [#allocation8], 1 }
 0x370   :  { %582 = vsyncpa [#allocation8 + $0x1], 1 }
 0x371   :  { %583 = vsyncpa [#allocation11], 1 }
 0x372   :  { %585 = vsyncpa [#allocation11 + $0x1], 1 }
 0x373   :  { %586 = vsyncpa [#allocation9], 1 }
 0x374   :  { %588 = vsyncpa [#allocation9 + $0x1], 1 }

</bundles_post_ra>
